<compile_context>
chip_gen: v7x
topology: tpu7x:2x2x1
jax: 0.10.0
libtpu: 0.0.40
codegen_flags: <defaults>
</compile_context>

<pallas_src>
import functools

import jax
import jax.numpy as jnp
from jax.experimental import pallas as pl
from jax.experimental.pallas import tpu as pltpu

EPS = 1e-5
LEAKY_SLOPE = 0.01  # nn.LeakyReLU() default


# ---------------------------------------------------------------------------
# small helpers
# ---------------------------------------------------------------------------
def _round_up(x, m):
    return (x + m - 1) // m * m


def _tpu_vmem_bytes():
    try:
        return int(pltpu.get_tpu_info().vmem_capacity_bytes)
    except Exception:
        return 64 * 1024 * 1024  # conservative (v7x per-TensorCore VMEM)


_VMEM_BYTES = _tpu_vmem_bytes()
_VMEM_LIMIT = int(min(_VMEM_BYTES // 2, 64 * 1024 * 1024))
_TILE_BUDGET = int(min(_VMEM_BYTES // 8, 16 * 1024 * 1024))


def _choose_tile_m(m, k_pad, c_pad):
    """Pick an M tile so the double-buffered patch/out blocks fit the VMEM budget."""
    # 2 buffers * bf16 patch row + 2 buffers * f32 output row
    per_row = 2 * (k_pad * 2) + 2 * (c_pad * 4)
    tm = _TILE_BUDGET // per_row
    tm = int(max(8, min(tm, 2048)))
    tm = (tm // 8) * 8
    m_pad8 = _round_up(max(m, 8), 8)
    if tm >= m_pad8:
        return m_pad8, m_pad8
    return tm, _round_up(m, tm)


# ---------------------------------------------------------------------------
# Pallas kernels
# ---------------------------------------------------------------------------
def _matmul_stats_kernel(p_ref, w_ref, sum_ref, sq_ref):
    """Pass 1: y = p @ w (bf16 -> f32); accumulate per-column sum and sum-of-squares."""

    @pl.when(pl.program_id(0) == 0)
    def _init():
        sum_ref[...] = jnp.zeros_like(sum_ref)
        sq_ref[...] = jnp.zeros_like(sq_ref)

    y = jnp.dot(p_ref[...], w_ref[...], preferred_element_type=jnp.float32)
    sum_ref[...] += jnp.sum(y, axis=0, keepdims=True)
    sq_ref[...] += jnp.sum(y * y, axis=0, keepdims=True)


def _matmul_affine_act_kernel(p_ref, w_ref, scale_ref, shift_ref, o_ref, *, leaky):
    """Pass 2: y = p @ w (bf16 -> f32); out = act(y * scale + shift)."""
    y = jnp.dot(p_ref[...], w_ref[...], preferred_element_type=jnp.float32)
    z = y * scale_ref[...] + shift_ref[...]
    if leaky:
        o_ref[...] = jnp.where(z >= 0, z, LEAKY_SLOPE * z)  # LeakyReLU(0.01)
    else:
        o_ref[...] = jnp.maximum(z, 0.0)  # ReLU


# ---------------------------------------------------------------------------
# fused (im2col matmul -> BatchNorm(train) -> activation), tiled over M
# ---------------------------------------------------------------------------
def matmul_bn_act(patches, w_mat, gamma, beta, *, n_rep, leaky):
    """patches (M, K) f32, w_mat (K, C) f32 with C = n_rep * C_real columns laid out
    parity-major (column = p * C_real + c).  BatchNorm statistics for channel c are
    reduced over all rows AND the n_rep column copies of c.  Returns (M, C) f32."""
    M, K = patches.shape
    K2, C = w_mat.shape
    assert K == K2 and C % n_rep == 0
    c_real = C // n_rep

    k_pad = _round_up(K, 128)
    c_pad = _round_up(C, 128)
    tm, m_pad = _choose_tile_m(M, k_pad, c_pad)
    grid_m = m_pad // tm

    # zero padding: padded rows / K-cols contribute 0 to dot & stats; padded C-cols
    # are sliced off at the end.
    p_b = jnp.pad(patches, ((0, m_pad - M), (0, k_pad - K))).astype(jnp.bfloat16)
    w_b = jnp.pad(w_mat, ((0, k_pad - K), (0, c_pad - C))).astype(jnp.bfloat16)

    # ---- pass 1: per-column sum / sum-of-squares (resident accumulator outputs)
    col_sum_row, col_sq_row = pl.pallas_call(
        _matmul_stats_kernel,
        out_shape=(
            jax.ShapeDtypeStruct((1, c_pad), jnp.float32),
            jax.ShapeDtypeStruct((1, c_pad), jnp.float32),
        ),
        grid=(grid_m,),
        in_specs=[
            pl.BlockSpec((tm, k_pad), lambda i: (i, 0)),
            pl.BlockSpec((k_pad, c_pad), lambda i: (0, 0)),
        ],
        out_specs=[
            pl.BlockSpec((1, c_pad), lambda i: (0, 0)),
            pl.BlockSpec((1, c_pad), lambda i: (0, 0)),
        ],
        compiler_params=pltpu.CompilerParams(
            dimension_semantics=("arbitrary",),  # cross-tile reduction
            vmem_limit_bytes=_VMEM_LIMIT,
        ),
    )(p_b, w_b)

    # ---- tiny per-channel math: training-mode BatchNorm2d (biased variance)
    col_sum = col_sum_row[0, :C].reshape(n_rep, c_real).sum(axis=0)
    col_sq = col_sq_row[0, :C].reshape(n_rep, c_real).sum(axis=0)
    count = float(M * n_rep)  # real element count per BN channel
    mean = col_sum / count
    var = col_sq / count - mean * mean
    scale_c = gamma * jax.lax.rsqrt(var + EPS)
    shift_c = beta - mean * scale_c
    scale_row = jnp.pad(jnp.tile(scale_c, (n_rep,)), (0, c_pad - C)).reshape(1, c_pad)
    shift_row = jnp.pad(jnp.tile(shift_c, (n_rep,)), (0, c_pad - C)).reshape(1, c_pad)

    # ---- pass 2: recompute matmul tile, apply affine BN + activation
    out = pl.pallas_call(
        functools.partial(_matmul_affine_act_kernel, leaky=leaky),
        out_shape=jax.ShapeDtypeStruct((m_pad, c_pad), jnp.float32),
        grid=(grid_m,),
        in_specs=[
            pl.BlockSpec((tm, k_pad), lambda i: (i, 0)),
            pl.BlockSpec((k_pad, c_pad), lambda i: (0, 0)),
            pl.BlockSpec((1, c_pad), lambda i: (0, 0)),
            pl.BlockSpec((1, c_pad), lambda i: (0, 0)),
        ],
        out_specs=pl.BlockSpec((tm, c_pad), lambda i: (i, 0)),
        compiler_params=pltpu.CompilerParams(
            dimension_semantics=("parallel",),  # independent tiles -> 2 TCs on v7x
            vmem_limit_bytes=_VMEM_LIMIT,
        ),
    )(p_b, w_b, scale_row, shift_row)

    return out[:M, :C]


# ---------------------------------------------------------------------------
# layout plumbing (im2col, ConvTranspose sub-pixel decomposition)
# ---------------------------------------------------------------------------
def _im2col(x_nhwc, *, k, stride, pad):
    N, H, W, C = x_nhwc.shape
    xp = jnp.pad(x_nhwc, ((0, 0), (pad, pad), (pad, pad), (0, 0)))
    ho = (H + 2 * pad - k) // stride + 1
    wo = (W + 2 * pad - k) // stride + 1
    patches = []
    for kh in range(k):
        for kw in range(k):
            patches.append(
                xp[:, kh : kh + stride * ho : stride, kw : kw + stride * wo : stride, :]
            )
    p = jnp.stack(patches, axis=3)  # (N, ho, wo, k*k, C)
    return p.reshape(N * ho * wo, k * k * C), ho, wo


def _convtranspose_subpixel_weight(wt):
    """Combined weight for the sub-pixel decomposition of ConvTranspose2d(4, s=2, p=1).

    wt: PyTorch ConvTranspose2d weight (Cin, Cout, 4, 4).  Returns (3*3*Cin, 4*Cout):
    rows index a 3x3 window of the pad-1 low-res input, columns are (ph, pw, cout);
    the output pixel at (2m+ph, 2n+pw) uses only the 2x2 sub-window of that parity
    (the other taps are zero)."""
    cin, cout = wt.shape[0], wt.shape[1]
    w = jnp.zeros((3, 3, cin, 2, 2, cout), jnp.float32)
    for ph in range(2):
        for pw in range(2):
            for a in (ph, ph + 1):      # window row used by this parity
                for b in (pw, pw + 1):  # window col used by this parity
                    kh = 3 + ph - 2 * a
                    kw = 3 + pw - 2 * b
                    w = w.at[a, b, :, ph, pw, :].set(wt[:, :, kh, kw])
    return w.reshape(3 * 3 * cin, 2 * 2 * cout)


# ---------------------------------------------------------------------------
# UnetBlock forward
# ---------------------------------------------------------------------------
def unet_block_forward(x_nchw, params):
    N, Cin, H, W = x_nchw.shape
    x = jnp.transpose(x_nchw, (0, 2, 3, 1)).astype(jnp.float32)  # NHWC

    # down: Conv2d(Cin->Cmid, 4, s=2, p=1, bias=False) + BN(train) + LeakyReLU(0.01)
    p1, ho, wo = _im2col(x, k=4, stride=2, pad=1)                 # (N*ho*wo, 16*Cin)
    w1 = params["w_down"]                                         # (Cmid, Cin, 4, 4)
    cmid = w1.shape[0]
    w1m = jnp.transpose(w1, (2, 3, 1, 0)).reshape(16 * Cin, cmid)
    y1 = matmul_bn_act(p1, w1m, params["gamma_down"], params["beta_down"],
                       n_rep=1, leaky=True)
    y1 = y1.reshape(N, ho, wo, cmid)

    # up: ConvTranspose2d(Cmid->Cout, 4, s=2, p=1, bias=False) + BN(train)
    #     + Dropout + ReLU, via sub-pixel decomposition (no zero-dilated buffer).
    # TODO(synk): nn.Dropout() is stochastic in train mode; implemented as
    # eval-mode identity here.
    wt = params["w_up"]                                           # (Cmid, Cout, 4, 4)
    cout = wt.shape[1]
    p2, _, _ = _im2col(y1, k=3, stride=1, pad=1)                  # (N*ho*wo, 9*Cmid)
    w2m = _convtranspose_subpixel_weight(wt)                      # (9*Cmid, 4*Cout)
    y2 = matmul_bn_act(p2, w2m, params["gamma_up"], params["beta_up"],
                       n_rep=4, leaky=False)                      # (N*ho*wo, 4*Cout)
    y2 = y2.reshape(N, ho, wo, 2, 2, cout)
    y2 = jnp.transpose(y2, (0, 1, 3, 2, 4, 5)).reshape(N, 2 * ho, 2 * wo, cout)
    y2_nchw = jnp.transpose(y2, (0, 3, 1, 2))

    # skip_connection=True -> channel concat (dim=1 in NCHW)
    return jnp.concatenate([x_nchw.astype(jnp.float32), y2_nchw], axis=1)


def init_params(key, in_filters, out_filters):
    # submodule=None => sub_in_filters = sub_out_filters = in_filters
    k1, k2, k3, k4, k5, k6 = jax.random.split(key, 6)
    return {
        "w_down": 0.1 * jax.random.normal(k1, (in_filters, in_filters, 4, 4), jnp.float32),
        "gamma_down": 1.0 + 0.05 * jax.random.normal(k2, (in_filters,), jnp.float32),
        "beta_down": 0.05 * jax.random.normal(k3, (in_filters,), jnp.float32),
        "w_up": 0.1 * jax.random.normal(k4, (in_filters, out_filters, 4, 4), jnp.float32),
        "gamma_up": 1.0 + 0.05 * jax.random.normal(k5, (out_filters,), jnp.float32),
        "beta_up": 0.05 * jax.random.normal(k6, (out_filters,), jnp.float32),
    }


# ---------------------------------------------------------------------------
# pure-JAX f32 reference (for validation only)
# ---------------------------------------------------------------------------
def _bn_train_ref(y, gamma, beta):
    mean = jnp.mean(y, axis=(0, 2, 3), keepdims=True)
    var = jnp.mean((y - mean) ** 2, axis=(0, 2, 3), keepdims=True)
    return (y - mean) * jax.lax.rsqrt(var + EPS) * gamma.reshape(1, -1, 1, 1) \
        + beta.reshape(1, -1, 1, 1)


def _reference_forward(x_nchw, params):
    x = x_nchw.astype(jnp.float32)
    y = jax.lax.conv_general_dilated(
        x, params["w_down"], window_strides=(2, 2), padding=((1, 1), (1, 1)),
        dimension_numbers=("NCHW", "OIHW", "NCHW"))
    y = _bn_train_ref(y, params["gamma_down"], params["beta_down"])
    y = jnp.where(y >= 0, y, LEAKY_SLOPE * y)
    w2 = jnp.transpose(jnp.flip(params["w_up"], (2, 3)), (1, 0, 2, 3))  # -> OIHW
    y = jax.lax.conv_general_dilated(
        y, w2, window_strides=(1, 1), padding=((2, 2), (2, 2)),
        lhs_dilation=(2, 2), dimension_numbers=("NCHW", "OIHW", "NCHW"))
    y = _bn_train_ref(y, params["gamma_up"], params["beta_up"])
    y = jnp.maximum(y, 0.0)
    return jnp.concatenate([x, y], axis=1)


if __name__ == "__main__":
    key = jax.random.PRNGKey(0)
    kx, kp = jax.random.split(key)

    in_filters, out_filters = 4, 4
    x = jax.random.normal(kx, (2, in_filters, 16, 16), jnp.float32)  # NCHW
    params = init_params(kp, in_filters, out_filters)

    out = jax.jit(unet_block_forward)(x, params)
    out = jax.block_until_ready(out)

    assert out.shape == (2, in_filters + out_filters, 16, 16), out.shape
    assert bool(jnp.all(jnp.isfinite(out)))

    # validate against the f32 reference (loose tolerance: MXU inputs are bf16)
    ref = _reference_forward(x, params)
    max_err = float(jnp.max(jnp.abs(out - ref)))
    assert max_err < 2e-1, f"max abs error vs reference: {max_err}"

    print("KERNEL_OK")
</pallas_src>

<mosaic_0001>
module attributes {stable_mosaic.version = 11 : i64} {
  func.func @_matmul_stats_kernel(%arg0: i32, %arg1: memref<128x128xbf16, #tpu.memory_space<vmem>>, %arg2: memref<128x128xbf16, #tpu.memory_space<vmem>>, %arg3: memref<1x128xf32, #tpu.memory_space<vmem>>, %arg4: memref<1x128xf32, #tpu.memory_space<vmem>>) attributes {dimension_semantics = [#tpu.dimension_semantics<arbitrary>], iteration_bounds = array<i64: 1>, scalar_prefetch = 0 : i64, scratch_operands = 0 : i64, tpu.core_type = #tpu.core_type<tc>, window_params = [{transform_indices = @transform_0, window_bounds = array<i64: 128, 128>}, {pipeline_mode = #tpu.pipeline_mode<synchronous>, transform_indices = @transform_1, window_bounds = array<i64: 128, 128>}, {pipeline_mode = #tpu.pipeline_mode<synchronous>, transform_indices = @transform_2, window_bounds = array<i64: 1, 128>}, {pipeline_mode = #tpu.pipeline_mode<synchronous>, transform_indices = @transform_3, window_bounds = array<i64: 1, 128>}]} {
    %c0_i32 = arith.constant 0 : i32
    %0 = arith.cmpi eq, %arg0, %c0_i32 : i32
    %1 = arith.extui %0 : i1 to i32
    %c0_i32_0 = arith.constant 0 : i32
    %2 = arith.cmpi ne, %1, %c0_i32_0 : i32
    scf.if %2 {
      %cst_14 = arith.constant 0.000000e+00 : f32
      %17 = vector.broadcast %cst_14 : f32 to vector<1x128xf32>
      %c0_15 = arith.constant 0 : index
      %c0_16 = arith.constant 0 : index
      %18 = vector.load %arg3[%c0_15, %c0_16] : memref<1x128xf32, #tpu.memory_space<vmem>>, vector<1x128xf32>
      tpu.vector_store %arg3[%c0_15, %c0_16], %17 {strides = array<i32>} : memref<1x128xf32, #tpu.memory_space<vmem>>, vector<1x128xf32>,
      %cst_17 = arith.constant 0.000000e+00 : f32
      %19 = vector.broadcast %cst_17 : f32 to vector<1x128xf32>
      %c0_18 = arith.constant 0 : index
      %c0_19 = arith.constant 0 : index
      %20 = vector.load %arg4[%c0_18, %c0_19] : memref<1x128xf32, #tpu.memory_space<vmem>>, vector<1x128xf32>
      tpu.vector_store %arg4[%c0_18, %c0_19], %19 {strides = array<i32>} : memref<1x128xf32, #tpu.memory_space<vmem>>, vector<1x128xf32>,
    } else {
    }
    %c0 = arith.constant 0 : index
    %c0_1 = arith.constant 0 : index
    %3 = vector.load %arg1[%c0, %c0_1] : memref<128x128xbf16, #tpu.memory_space<vmem>>, vector<128x128xbf16>
    %c0_2 = arith.constant 0 : index
    %c0_3 = arith.constant 0 : index
    %4 = vector.load %arg2[%c0_2, %c0_3] : memref<128x128xbf16, #tpu.memory_space<vmem>>, vector<128x128xbf16>
    %cst = arith.constant dense<0.000000e+00> : vector<128x128xf32>
    %5 = tpu.matmul %3, %4, %cst {dimension_numbers = #tpu.dot_dimension_numbers<[1], [0], [0], [1], [0, 0, 1, 1], [], []>} : vector<128x128xbf16>, vector<128x128xbf16>, vector<128x128xf32> -> vector<128x128xf32>
    %c0_4 = arith.constant 0 : index
    %c0_5 = arith.constant 0 : index
    %6 = vector.load %arg3[%c0_4, %c0_5] : memref<1x128xf32, #tpu.memory_space<vmem>>, vector<1x128xf32>
    %cst_6 = arith.constant dense<0.000000e+00> : vector<128xf32>
    %7 = vector.multi_reduction <add>, %5, %cst_6 [0] : vector<128x128xf32> to vector<128xf32>
    %8 = vector.shape_cast %7 : vector<128xf32> to vector<1x128xf32>
    %9 = arith.addf %6, %8 : vector<1x128xf32>
    %c0_7 = arith.constant 0 : index
    %c0_8 = arith.constant 0 : index
    %10 = vector.load %arg3[%c0_7, %c0_8] : memref<1x128xf32, #tpu.memory_space<vmem>>, vector<1x128xf32>
    tpu.vector_store %arg3[%c0_7, %c0_8], %9 {strides = array<i32>} : memref<1x128xf32, #tpu.memory_space<vmem>>, vector<1x128xf32>,
    %c0_9 = arith.constant 0 : index
    %c0_10 = arith.constant 0 : index
    %11 = vector.load %arg4[%c0_9, %c0_10] : memref<1x128xf32, #tpu.memory_space<vmem>>, vector<1x128xf32>
    %12 = arith.mulf %5, %5 : vector<128x128xf32>
    %cst_11 = arith.constant dense<0.000000e+00> : vector<128xf32>
    %13 = vector.multi_reduction <add>, %12, %cst_11 [0] : vector<128x128xf32> to vector<128xf32>
    %14 = vector.shape_cast %13 : vector<128xf32> to vector<1x128xf32>
    %15 = arith.addf %11, %14 : vector<1x128xf32>
    %c0_12 = arith.constant 0 : index
    %c0_13 = arith.constant 0 : index
    %16 = vector.load %arg4[%c0_12, %c0_13] : memref<1x128xf32, #tpu.memory_space<vmem>>, vector<1x128xf32>
    tpu.vector_store %arg4[%c0_12, %c0_13], %15 {strides = array<i32>} : memref<1x128xf32, #tpu.memory_space<vmem>>, vector<1x128xf32>,
    return
  }
  func.func @transform_0(%arg0: i32) -> (i32, i32) {
    %c0_i32 = arith.constant 0 : i32
    %c0_i32_0 = arith.constant 0 : i32
    return %arg0, %c0_i32 : i32, i32
  }
  func.func @transform_1(%arg0: i32) -> (i32, i32) {
    %c0_i32 = arith.constant 0 : i32
    %c0_i32_0 = arith.constant 0 : i32
    %c0_i32_1 = arith.constant 0 : i32
    return %c0_i32, %c0_i32_0 : i32, i32
  }
  func.func @transform_2(%arg0: i32) -> (i32, i32) {
    %c0_i32 = arith.constant 0 : i32
    %c0_i32_0 = arith.constant 0 : i32
    %c0_i32_1 = arith.constant 0 : i32
    return %c0_i32, %c0_i32_0 : i32, i32
  }
  func.func @transform_3(%arg0: i32) -> (i32, i32) {
    %c0_i32 = arith.constant 0 : i32
    %c0_i32_0 = arith.constant 0 : i32
    %c0_i32_1 = arith.constant 0 : i32
    return %c0_i32, %c0_i32_0 : i32, i32
  }
}

module attributes {stable_mosaic.version = 11 : i64} {
  func.func @_matmul_affine_act_kernel(%arg0: i32, %arg1: memref<128x128xbf16, #tpu.memory_space<vmem>>, %arg2: memref<128x128xbf16, #tpu.memory_space<vmem>>, %arg3: memref<1x128xf32, #tpu.memory_space<vmem>>, %arg4: memref<1x128xf32, #tpu.memory_space<vmem>>, %arg5: memref<128x128xf32, #tpu.memory_space<vmem>>) attributes {dimension_semantics = [#tpu.dimension_semantics<parallel>], iteration_bounds = array<i64: 1>, scalar_prefetch = 0 : i64, scratch_operands = 0 : i64, tpu.core_type = #tpu.core_type<tc>, window_params = [{transform_indices = @transform_0, window_bounds = array<i64: 128, 128>}, {pipeline_mode = #tpu.pipeline_mode<synchronous>, transform_indices = @transform_1, window_bounds = array<i64: 128, 128>}, {pipeline_mode = #tpu.pipeline_mode<synchronous>, transform_indices = @transform_2, window_bounds = array<i64: 1, 128>}, {pipeline_mode = #tpu.pipeline_mode<synchronous>, transform_indices = @transform_3, window_bounds = array<i64: 1, 128>}, {transform_indices = @transform_4, window_bounds = array<i64: 128, 128>}]} {
    %c0 = arith.constant 0 : index
    %c0_0 = arith.constant 0 : index
    %0 = vector.load %arg1[%c0, %c0_0] : memref<128x128xbf16, #tpu.memory_space<vmem>>, vector<128x128xbf16>
    %c0_1 = arith.constant 0 : index
    %c0_2 = arith.constant 0 : index
    %1 = vector.load %arg2[%c0_1, %c0_2] : memref<128x128xbf16, #tpu.memory_space<vmem>>, vector<128x128xbf16>
    %cst = arith.constant dense<0.000000e+00> : vector<128x128xf32>
    %2 = tpu.matmul %0, %1, %cst {dimension_numbers = #tpu.dot_dimension_numbers<[1], [0], [0], [1], [0, 0, 1, 1], [], []>} : vector<128x128xbf16>, vector<128x128xbf16>, vector<128x128xf32> -> vector<128x128xf32>
    %c0_3 = arith.constant 0 : index
    %c0_4 = arith.constant 0 : index
    %3 = vector.load %arg3[%c0_3, %c0_4] : memref<1x128xf32, #tpu.memory_space<vmem>>, vector<1x128xf32>
    %4 = vector.broadcast %3 : vector<1x128xf32> to vector<128x128xf32>
    %5 = arith.mulf %2, %4 : vector<128x128xf32>
    %c0_5 = arith.constant 0 : index
    %c0_6 = arith.constant 0 : index
    %6 = vector.load %arg4[%c0_5, %c0_6] : memref<1x128xf32, #tpu.memory_space<vmem>>, vector<1x128xf32>
    %7 = vector.broadcast %6 : vector<1x128xf32> to vector<128x128xf32>
    %8 = arith.addf %5, %7 : vector<128x128xf32>
    %cst_7 = arith.constant 0.000000e+00 : f32
    %9 = vector.broadcast %cst_7 : f32 to vector<128x128xf32>
    %10 = arith.cmpf oge, %8, %9 : vector<128x128xf32>
    %cst_8 = arith.constant 0.00999999977 : f32
    %11 = vector.broadcast %cst_8 : f32 to vector<128x128xf32>
    %12 = arith.mulf %11, %8 : vector<128x128xf32>
    %13 = arith.select %10, %8, %12 : vector<128x128xi1>, vector<128x128xf32>
    %c0_9 = arith.constant 0 : index
    %c0_10 = arith.constant 0 : index
    %14 = vector.load %arg5[%c0_9, %c0_10] : memref<128x128xf32, #tpu.memory_space<vmem>>, vector<128x128xf32>
    tpu.vector_store %arg5[%c0_9, %c0_10], %13 {strides = array<i32>} : memref<128x128xf32, #tpu.memory_space<vmem>>, vector<128x128xf32>,
    return
  }
  func.func @transform_0(%arg0: i32) -> (i32, i32) {
    %c0_i32 = arith.constant 0 : i32
    %c0_i32_0 = arith.constant 0 : i32
    return %arg0, %c0_i32 : i32, i32
  }
  func.func @transform_1(%arg0: i32) -> (i32, i32) {
    %c0_i32 = arith.constant 0 : i32
    %c0_i32_0 = arith.constant 0 : i32
    %c0_i32_1 = arith.constant 0 : i32
    return %c0_i32, %c0_i32_0 : i32, i32
  }
  func.func @transform_2(%arg0: i32) -> (i32, i32) {
    %c0_i32 = arith.constant 0 : i32
    %c0_i32_0 = arith.constant 0 : i32
    %c0_i32_1 = arith.constant 0 : i32
    return %c0_i32, %c0_i32_0 : i32, i32
  }
  func.func @transform_3(%arg0: i32) -> (i32, i32) {
    %c0_i32 = arith.constant 0 : i32
    %c0_i32_0 = arith.constant 0 : i32
    %c0_i32_1 = arith.constant 0 : i32
    return %c0_i32, %c0_i32_0 : i32, i32
  }
  func.func @transform_4(%arg0: i32) -> (i32, i32) {
    %c0_i32 = arith.constant 0 : i32
    %c0_i32_0 = arith.constant 0 : i32
    return %arg0, %c0_i32 : i32, i32
  }
}

module attributes {stable_mosaic.version = 11 : i64} {
  func.func @_matmul_affine_act_kernel(%arg0: i32, %arg1: memref<128x128xbf16, #tpu.memory_space<vmem>>, %arg2: memref<128x128xbf16, #tpu.memory_space<vmem>>, %arg3: memref<1x128xf32, #tpu.memory_space<vmem>>, %arg4: memref<1x128xf32, #tpu.memory_space<vmem>>, %arg5: memref<128x128xf32, #tpu.memory_space<vmem>>) attributes {dimension_semantics = [#tpu.dimension_semantics<parallel>], iteration_bounds = array<i64: 1>, scalar_prefetch = 0 : i64, scratch_operands = 0 : i64, tpu.core_type = #tpu.core_type<tc>, window_params = [{transform_indices = @transform_0, window_bounds = array<i64: 128, 128>}, {pipeline_mode = #tpu.pipeline_mode<synchronous>, transform_indices = @transform_1, window_bounds = array<i64: 128, 128>}, {pipeline_mode = #tpu.pipeline_mode<synchronous>, transform_indices = @transform_2, window_bounds = array<i64: 1, 128>}, {pipeline_mode = #tpu.pipeline_mode<synchronous>, transform_indices = @transform_3, window_bounds = array<i64: 1, 128>}, {transform_indices = @transform_4, window_bounds = array<i64: 128, 128>}]} {
    %c0 = arith.constant 0 : index
    %c0_0 = arith.constant 0 : index
    %0 = vector.load %arg1[%c0, %c0_0] : memref<128x128xbf16, #tpu.memory_space<vmem>>, vector<128x128xbf16>
    %c0_1 = arith.constant 0 : index
    %c0_2 = arith.constant 0 : index
    %1 = vector.load %arg2[%c0_1, %c0_2] : memref<128x128xbf16, #tpu.memory_space<vmem>>, vector<128x128xbf16>
    %cst = arith.constant dense<0.000000e+00> : vector<128x128xf32>
    %2 = tpu.matmul %0, %1, %cst {dimension_numbers = #tpu.dot_dimension_numbers<[1], [0], [0], [1], [0, 0, 1, 1], [], []>} : vector<128x128xbf16>, vector<128x128xbf16>, vector<128x128xf32> -> vector<128x128xf32>
    %c0_3 = arith.constant 0 : index
    %c0_4 = arith.constant 0 : index
    %3 = vector.load %arg3[%c0_3, %c0_4] : memref<1x128xf32, #tpu.memory_space<vmem>>, vector<1x128xf32>
    %4 = vector.broadcast %3 : vector<1x128xf32> to vector<128x128xf32>
    %5 = arith.mulf %2, %4 : vector<128x128xf32>
    %c0_5 = arith.constant 0 : index
    %c0_6 = arith.constant 0 : index
    %6 = vector.load %arg4[%c0_5, %c0_6] : memref<1x128xf32, #tpu.memory_space<vmem>>, vector<1x128xf32>
    %7 = vector.broadcast %6 : vector<1x128xf32> to vector<128x128xf32>
    %8 = arith.addf %5, %7 : vector<128x128xf32>
    %cst_7 = arith.constant 0.000000e+00 : f32
    %9 = vector.broadcast %cst_7 : f32 to vector<128x128xf32>
    %10 = arith.maximumf %8, %9 : vector<128x128xf32>
    %c0_8 = arith.constant 0 : index
    %c0_9 = arith.constant 0 : index
    %11 = vector.load %arg5[%c0_8, %c0_9] : memref<128x128xf32, #tpu.memory_space<vmem>>, vector<128x128xf32>
    tpu.vector_store %arg5[%c0_8, %c0_9], %10 {strides = array<i32>} : memref<128x128xf32, #tpu.memory_space<vmem>>, vector<128x128xf32>,
    return
  }
  func.func @transform_0(%arg0: i32) -> (i32, i32) {
    %c0_i32 = arith.constant 0 : i32
    %c0_i32_0 = arith.constant 0 : i32
    return %arg0, %c0_i32 : i32, i32
  }
  func.func @transform_1(%arg0: i32) -> (i32, i32) {
    %c0_i32 = arith.constant 0 : i32
    %c0_i32_0 = arith.constant 0 : i32
    %c0_i32_1 = arith.constant 0 : i32
    return %c0_i32, %c0_i32_0 : i32, i32
  }
  func.func @transform_2(%arg0: i32) -> (i32, i32) {
    %c0_i32 = arith.constant 0 : i32
    %c0_i32_0 = arith.constant 0 : i32
    %c0_i32_1 = arith.constant 0 : i32
    return %c0_i32, %c0_i32_0 : i32, i32
  }
  func.func @transform_3(%arg0: i32) -> (i32, i32) {
    %c0_i32 = arith.constant 0 : i32
    %c0_i32_0 = arith.constant 0 : i32
    %c0_i32_1 = arith.constant 0 : i32
    return %c0_i32, %c0_i32_0 : i32, i32
  }
  func.func @transform_4(%arg0: i32) -> (i32, i32) {
    %c0_i32 = arith.constant 0 : i32
    %c0_i32_0 = arith.constant 0 : i32
    return %arg0, %c0_i32 : i32, i32
  }
}

</mosaic_0001>

<bundles_post_ra>
// kernel: unet_block_forward.5
= control target key start
LH: loop header
LB: loop body
LE: loop exit
PB: predicated region body
PF: predicated region fallthrough
CT: control target
= control target key end

     0   :  { %s618_s1 = inlined_call_operand.vmem [shape: bf16[128,128], index: 1, kind: input, shape index: {}]   ;;  %s619_s0 = inlined_call_operand.vmem [shape: bf16[128,128], index: 0, kind: input, shape index: {}]   ;;  %s620_s2 = inlined_call_operand.vmem [shape: f32[1,128], index: 2, kind: input, shape index: {}]   ;;  %s621_s3 = inlined_call_operand.vmem [shape: f32[1,128], index: 3, kind: input, shape index: {}]   ;;  %s622_s4 = inlined_call_operand.vmem [shape: f32[128,128], index: 4, kind: output, shape index: {}]  }
   0x1   :  { %v439_v0 = vld [vmem:[%s618_s1] sm:$0xff]   ;;  %v440_v1 = vld [vmem:[%s618_s1 + $0x8] sm:$0xff]   ;;  %v441_v2 = vld [vmem:[%s618_s1 + $0x10] sm:$0xff]  }
   0x2   :  { %391 = vmatprep.subr.bf16.mxu0 %v439_v0  ;;  %423 = vmatprep.subr.bf16.mxu1 %v439_v0  ;;  %v442_v3 = vld [vmem:[%s618_s1 + $0x18] sm:$0xff]   ;;  %v447_v4 = vld [vmem:[%s619_s0] sm:$0xff]   ;;  %v444_v7 = vld [vmem:[%s618_s1 + $0x28] sm:$0xff]  }
   0x3   :  { %392 = vmatpush3.bf16.msra.mxu0 %v439_v0  ;;  %431 = vmatpush3.bf16.msra.mxu1 %v439_v0  ;;  %v448_v5 = vld [vmem:[%s619_s0 + $0x20] sm:$0xff]   ;;  %v445_v8 = vld [vmem:[%s618_s1 + $0x30] sm:$0xff]   ;;  %v446_v9 = vld [vmem:[%s618_s1 + $0x38] sm:$0xff]  }
   0x4   :  { %393 = vmatprep.subr.bf16.mxu0 %v440_v1  ;;  %424 = vmatprep.subr.bf16.mxu1 %v440_v1  ;;  %v443_v6 = vld [vmem:[%s618_s1 + $0x20] sm:$0xff]   ;;  %v449_v10 = vld [vmem:[%s619_s0 + $0x8] sm:$0xff]   ;;  %v451_v12 = vld [vmem:[%s619_s0 + $0x10] sm:$0xff]  }
   0x5   :  { %407 = vmatprep.mubr.bf16.mxu0 %v447_v4  ;;  %415 = vmatprep.mubr.bf16.mxu1 %v448_v5  ;;  %v450_v11 = vld [vmem:[%s619_s0 + $0x28] sm:$0xff]   ;;  %v452_v13 = vld [vmem:[%s619_s0 + $0x30] sm:$0xff]   ;;  %v453_v14 = vld [vmem:[%s619_s0 + $0x18] sm:$0xff]  }
   0x6   :  { %v454_v15 = vld [vmem:[%s619_s0 + $0x38] sm:$0xff]   ;;  %v531_v16 = vld [vmem:[%s620_s2] ss:$0 sm:$0xff] }
   0x7   :  { %394 = vmatpush3.bf16.msra.mxu0 %v440_v1  ;;  %432 = vmatpush3.bf16.msra.mxu1 %v440_v1  ;;  %v536_v18 = vld [vmem:[%s621_s3] ss:$0 sm:$0xff] }
   0x8   :  { %395 = vmatprep.subr.bf16.mxu0 %v441_v2  ;;  %425 = vmatprep.subr.bf16.mxu1 %v441_v2 }
   0xb   :  { %396 = vmatpush3.bf16.msra.mxu0 %v441_v2  ;;  %433 = vmatpush3.bf16.msra.mxu1 %v441_v2 }
   0xc   :  { %397 = vmatprep.subr.bf16.mxu0 %v442_v3  ;;  %426 = vmatprep.subr.bf16.mxu1 %v442_v3 }
   0xf   :  { %398 = vmatpush3.bf16.msra.mxu0 %v442_v3  ;;  %434 = vmatpush3.bf16.msra.mxu1 %v442_v3 }
  0x10   :  { %399 = vmatprep.subr.bf16.mxu0 %v443_v6  ;;  %427 = vmatprep.subr.bf16.mxu1 %v443_v6 }
  0x13   :  { %400 = vmatpush3.bf16.msra.mxu0 %v443_v6  ;;  %435 = vmatpush3.bf16.msra.mxu1 %v443_v6 }
  0x14   :  { %401 = vmatprep.subr.bf16.mxu0 %v444_v7  ;;  %428 = vmatprep.subr.bf16.mxu1 %v444_v7 }
  0x17   :  { %402 = vmatpush3.bf16.msra.mxu0 %v444_v7  ;;  %436 = vmatpush3.bf16.msra.mxu1 %v444_v7 }
  0x18   :  { %403 = vmatprep.subr.bf16.mxu0 %v445_v8  ;;  %429 = vmatprep.subr.bf16.mxu1 %v445_v8 }
  0x1b   :  { %404 = vmatpush3.bf16.msra.mxu0 %v445_v8  ;;  %437 = vmatpush3.bf16.msra.mxu1 %v445_v8 }
  0x1c   :  { %405 = vmatprep.subr.bf16.mxu0 %v446_v9  ;;  %430 = vmatprep.subr.bf16.mxu1 %v446_v9 }
  0x1f   :  { %406 = vmatpush3.bf16.msra.mxu0 %v446_v9  ;;  %438 = vmatpush3.bf16.msra.mxu1 %v446_v9 }
  0x22   :  { %408 = vmatmul.mubr.bf16.vlgmr.msra.gmra.mrb[0].mxu0 %v449_v10  ;;  %416 = vmatmul.mubr.bf16.vlgmr.msra.gmra.mrb[0].mxu1 %v450_v11 }
  0x23   :  { %411 = vmatprep.mubr.bf16.mxu0 %v451_v12  ;;  %419 = vmatprep.mubr.bf16.mxu1 %v452_v13 }
  0x2a   :  { %412 = vmatmul.mubr.bf16.gmra.mrb[4].mxu0 %v453_v14  ;;  %420 = vmatmul.mubr.bf16.gmra.mrb[4].mxu1 %v454_v15 }
  0xf5   :  { %v409_v17 = vpop.f32.mrb[0].mxu0  ;;  %v417_v19 = vpop.f32.mrb[0].mxu1 }
  0xf6   :  { %v252_v20 = vmul.f32 %v409_v17, %v531_v16  ;;  %v260_v21 = vmul.f32 %v417_v19, %v531_v16  ;;  %v180_v22 = vpop.f32.mrb[1].mxu0  ;;  %v212_v23 = vpop.f32.mrb[1].mxu1 }
  0xf7   :  { %v250_v24 = vmul.f32 %v531_v16, %v180_v22  ;;  %v258_v25 = vmul.f32 %v531_v16, %v212_v23  ;;  %v410_v26 = vpop.f32.mrb[2].mxu0  ;;  %v418_v27 = vpop.f32.mrb[2].mxu1 }
  0xf8   :  { %v275_v28 = vadd.f32 %v536_v18, %v252_v20  ;;  %v283_v29 = vadd.f32 %v536_v18, %v260_v21  ;;  %v253_v30 = vmul.f32 %v410_v26, %v531_v16  ;;  %v261_v31 = vmul.f32 %v418_v27, %v531_v16  ;;  %v183_v32 = vpop.f32.mrb[3].mxu0  ;;  %v215_v33 = vpop.f32.mrb[3].mxu1 }
  0xf9   :  { %v273_v34 = vadd.f32 %v536_v18, %v250_v24  ;;  %v281_v35 = vadd.f32 %v536_v18, %v258_v25  ;;  %v251_v36 = vmul.f32 %v531_v16, %v183_v32  ;;  %v259_v37 = vmul.f32 %v531_v16, %v215_v33 }
  0xfa   :  { %vm291_vm0 = vcmp.ge.f32.partialorder %v275_v28, 0.0  ;;  %v307_v38 = vmul.f32 0.01, %v275_v28  ;;  %vm299_vm1 = vcmp.ge.f32.partialorder %v283_v29, 0.0  ;;  %v315_v39 = vmul.f32 0.01, %v283_v29 }
  0xfb   :  { %vm289_vm2 = vcmp.ge.f32.partialorder %v273_v34, 0.0  ;;  %v305_v40 = vmul.f32 0.01, %v273_v34  ;;  %vm297_vm3 = vcmp.ge.f32.partialorder %v281_v35, 0.0  ;;  %v313_v41 = vmul.f32 0.01, %v281_v35 }
  0xfc   :  { %v323_v42 = vsel %vm291_vm0, %v275_v28, %v307_v38  ;;  %v331_v43 = vsel %vm299_vm1, %v283_v29, %v315_v39  ;;  %v276_v44 = vadd.f32 %v536_v18, %v253_v30  ;;  %v284_v45 = vadd.f32 %v536_v18, %v261_v31 }
  0xfd   :  { %339 = vst [vmem:[%s622_s4 + $0x10] sm:$0xff] %v323_v42  ;;  %347 = vst [vmem:[%s622_s4 + $0x50] sm:$0xff] %v331_v43  ;;  %v321_v46 = vsel %vm289_vm2, %v273_v34, %v305_v40  ;;  %v329_v47 = vsel %vm297_vm3, %v281_v35, %v313_v41  ;;  %v274_v48 = vadd.f32 %v536_v18, %v251_v36  ;;  %v413_v50 = vpop.f32.mrb[4].mxu0  ;;  %v421_v51 = vpop.f32.mrb[4].mxu1 }
  0xfe   :  { %v282_v49 = vadd.f32 %v536_v18, %v259_v37  ;;  %337 = vst [vmem:[%s622_s4] sm:$0xff] %v321_v46  ;;  %345 = vst [vmem:[%s622_s4 + $0x40] sm:$0xff] %v329_v47  ;;  %vm292_vm4 = vcmp.ge.f32.partialorder %v276_v44, 0.0  ;;  %v308_v52 = vmul.f32 0.01, %v276_v44  ;;  %vm300_vm5 = vcmp.ge.f32.partialorder %v284_v45, 0.0  ;;  %v196_v60 = vpop.f32.mrb[5].mxu0 }
  0xff   :  { %v316_v53 = vmul.f32 0.01, %v284_v45  ;;  %vm290_vm6 = vcmp.ge.f32.partialorder %v274_v48, 0.0  ;;  %v306_v54 = vmul.f32 0.01, %v274_v48  ;;  %v256_v58 = vmul.f32 %v413_v50, %v531_v16  ;;  %v228_v61 = vpop.f32.mrb[5].mxu1 }
 0x100   :  { %vm298_vm7 = vcmp.ge.f32.partialorder %v282_v49, 0.0  ;;  %v314_v55 = vmul.f32 0.01, %v282_v49  ;;  %v324_v56 = vsel %vm292_vm4, %v276_v44, %v308_v52  ;;  %v264_v59 = vmul.f32 %v421_v51, %v531_v16  ;;  %v414_v2 = vpop.f32.mrb[6].mxu0  ;;  %v422_v3 = vpop.f32.mrb[6].mxu1 }
 0x101   :  { %v332_v57 = vsel %vm300_vm5, %v284_v45, %v316_v53  ;;  %340 = vst [vmem:[%s622_s4 + $0x18] sm:$0xff] %v324_v56  ;;  %v322_v62 = vsel %vm290_vm6, %v274_v48, %v306_v54  ;;  %v254_v0 = vmul.f32 %v531_v16, %v196_v60  ;;  %v262_v1 = vmul.f32 %v531_v16, %v228_v61  ;;  %v199_v8 = vpop.f32.mrb[7].mxu0  ;;  %v231_v9 = vpop.f32.mrb[7].mxu1 }
 0x102   :  { %348 = vst [vmem:[%s622_s4 + $0x58] sm:$0xff] %v332_v57  ;;  %v330_v63 = vsel %vm298_vm7, %v282_v49, %v314_v55  ;;  %338 = vst [vmem:[%s622_s4 + $0x8] sm:$0xff] %v322_v62  ;;  %v279_v4 = vadd.f32 %v536_v18, %v256_v58  ;;  %v287_v5 = vadd.f32 %v536_v18, %v264_v59 }
 0x103   :  { %346 = vst [vmem:[%s622_s4 + $0x48] sm:$0xff] %v330_v63  ;;  %v257_v6 = vmul.f32 %v414_v2, %v531_v16  ;;  %v265_v7 = vmul.f32 %v422_v3, %v531_v16  ;;  %v277_v10 = vadd.f32 %v536_v18, %v254_v0  ;;  %v285_v11 = vadd.f32 %v536_v18, %v262_v1 }
 0x104   :  { %v255_v12 = vmul.f32 %v531_v16, %v199_v8  ;;  %v263_v13 = vmul.f32 %v531_v16, %v231_v9  ;;  %vm295_vm8 = vcmp.ge.f32.partialorder %v279_v4, 0.0  ;;  %v311_v14 = vmul.f32 0.01, %v279_v4 }
 0x105   :  { %vm303_vm9 = vcmp.ge.f32.partialorder %v287_v5, 0.0  ;;  %v319_v15 = vmul.f32 0.01, %v287_v5  ;;  %vm293_vm10 = vcmp.ge.f32.partialorder %v277_v10, 0.0  ;;  %v309_v17 = vmul.f32 0.01, %v277_v10 }
 0x106   :  { %vm301_vm11 = vcmp.ge.f32.partialorder %v285_v11, 0.0  ;;  %v317_v19 = vmul.f32 0.01, %v285_v11  ;;  %v327_v20 = vsel %vm295_vm8, %v279_v4, %v311_v14  ;;  %v280_v22 = vadd.f32 %v536_v18, %v257_v6 }
 0x107   :  { %v335_v21 = vsel %vm303_vm9, %v287_v5, %v319_v15  ;;  %v288_v23 = vadd.f32 %v536_v18, %v265_v7  ;;  %343 = vst [vmem:[%s622_s4 + $0x30] sm:$0xff] %v327_v20  ;;  %v325_v16 = vsel %vm293_vm10, %v277_v10, %v309_v17  ;;  %v278_v25 = vadd.f32 %v536_v18, %v255_v12 }
 0x108   :  { %351 = vst [vmem:[%s622_s4 + $0x70] sm:$0xff] %v335_v21  ;;  %v333_v24 = vsel %vm301_vm11, %v285_v11, %v317_v19  ;;  %v286_v26 = vadd.f32 %v536_v18, %v263_v13  ;;  %341 = vst [vmem:[%s622_s4 + $0x20] sm:$0xff] %v325_v16  ;;  %vm296_vm12 = vcmp.ge.f32.partialorder %v280_v22, 0.0  ;;  %v312_v27 = vmul.f32 0.01, %v280_v22 }
 0x109   :  { %349 = vst [vmem:[%s622_s4 + $0x60] sm:$0xff] %v333_v24  ;;  %vm304_vm13 = vcmp.ge.f32.partialorder %v288_v23, 0.0  ;;  %v320_v28 = vmul.f32 0.01, %v288_v23  ;;  %vm294_vm14 = vcmp.ge.f32.partialorder %v278_v25, 0.0 }
 0x10a   :  { %v310_v29 = vmul.f32 0.01, %v278_v25  ;;  %vm302_vm15 = vcmp.ge.f32.partialorder %v286_v26, 0.0  ;;  %v318_v30 = vmul.f32 0.01, %v286_v26  ;;  %v328_v31 = vsel %vm296_vm12, %v280_v22, %v312_v27 }
 0x10b   :  { %v336_v32 = vsel %vm304_vm13, %v288_v23, %v320_v28  ;;  %344 = vst [vmem:[%s622_s4 + $0x38] sm:$0xff] %v328_v31 }
 0x10c   :  { %352 = vst [vmem:[%s622_s4 + $0x78] sm:$0xff] %v336_v32  ;;  %v326_v18 = vsel %vm294_vm14, %v278_v25, %v310_v29  ;;  %v334_v33 = vsel %vm302_vm15, %v286_v26, %v318_v30 }
 0x10d   :  { %342 = vst [vmem:[%s622_s4 + $0x28] sm:$0xff] %v326_v18  ;;  %350 = vst [vmem:[%s622_s4 + $0x68] sm:$0xff] %v334_v33 }

// kernel: unet_block_forward.4
= control target key start
LH: loop header
LB: loop body
LE: loop exit
PB: predicated region body
PF: predicated region fallthrough
CT: control target
= control target key end

     0   :  { %v414_v16 = vmov 0.0   ;;  %s501_s1 = inlined_call_operand.vmem [shape: bf16[128,128], index: 1, kind: input, shape index: {}]   ;;  %s502_s0 = inlined_call_operand.vmem [shape: bf16[128,128], index: 0, kind: input, shape index: {}]   ;;  %s503_s2 = inlined_call_operand.vmem [shape: f32[1,128], index: 2, kind: output, shape index: {0}]   ;;  %s504_s3 = inlined_call_operand.vmem [shape: f32[1,128], index: 3, kind: output, shape index: {1}]  }
   0x1   :  { %v398_v0 = vld [vmem:[%s501_s1] sm:$0xff]   ;;  %v399_v1 = vld [vmem:[%s501_s1 + $0x8] sm:$0xff]   ;;  %v400_v2 = vld [vmem:[%s501_s1 + $0x10] sm:$0xff]   ;;  %18 = vst [vmem:[%s503_s2] sm:$0x1] %v414_v16 }
   0x2   :  { %349 = vmatprep.subr.bf16.mxu0 %v398_v0  ;;  %381 = vmatprep.subr.bf16.mxu1 %v398_v0  ;;  %v401_v3 = vld [vmem:[%s501_s1 + $0x18] sm:$0xff]   ;;  %v406_v4 = vld [vmem:[%s502_s0] sm:$0xff]   ;;  %v403_v7 = vld [vmem:[%s501_s1 + $0x28] sm:$0xff]   ;;  %19 = vst [vmem:[%s504_s3] sm:$0x1] %v414_v16 }
   0x3   :  { %350 = vmatpush3.bf16.msra.mxu0 %v398_v0  ;;  %389 = vmatpush3.bf16.msra.mxu1 %v398_v0  ;;  %v402_v5 = vld [vmem:[%s501_s1 + $0x20] sm:$0xff]   ;;  %v404_v8 = vld [vmem:[%s501_s1 + $0x30] sm:$0xff]   ;;  %v405_v9 = vld [vmem:[%s501_s1 + $0x38] sm:$0xff]  }
   0x4   :  { %351 = vmatprep.subr.bf16.mxu0 %v399_v1  ;;  %382 = vmatprep.subr.bf16.mxu1 %v399_v1  ;;  %v410_v6 = vld [vmem:[%s502_s0 + $0x20] sm:$0xff]   ;;  %v407_v10 = vld [vmem:[%s502_s0 + $0x8] sm:$0xff]   ;;  %v408_v12 = vld [vmem:[%s502_s0 + $0x10] sm:$0xff]  }
   0x5   :  { %365 = vmatprep.mubr.bf16.mxu0 %v406_v4  ;;  %373 = vmatprep.mubr.bf16.mxu1 %v410_v6  ;;  %v411_v11 = vld [vmem:[%s502_s0 + $0x28] sm:$0xff]   ;;  %v412_v13 = vld [vmem:[%s502_s0 + $0x30] sm:$0xff]   ;;  %v409_v14 = vld [vmem:[%s502_s0 + $0x18] sm:$0xff]  }
   0x6   :  { %v413_v15 = vld [vmem:[%s502_s0 + $0x38] sm:$0xff]  }
   0x7   :  { %352 = vmatpush3.bf16.msra.mxu0 %v399_v1  ;;  %390 = vmatpush3.bf16.msra.mxu1 %v399_v1 }
   0x8   :  { %353 = vmatprep.subr.bf16.mxu0 %v400_v2  ;;  %383 = vmatprep.subr.bf16.mxu1 %v400_v2 }
   0xb   :  { %354 = vmatpush3.bf16.msra.mxu0 %v400_v2  ;;  %391 = vmatpush3.bf16.msra.mxu1 %v400_v2 }
   0xc   :  { %355 = vmatprep.subr.bf16.mxu0 %v401_v3  ;;  %384 = vmatprep.subr.bf16.mxu1 %v401_v3 }
   0xf   :  { %356 = vmatpush3.bf16.msra.mxu0 %v401_v3  ;;  %392 = vmatpush3.bf16.msra.mxu1 %v401_v3 }
  0x10   :  { %357 = vmatprep.subr.bf16.mxu0 %v402_v5  ;;  %385 = vmatprep.subr.bf16.mxu1 %v402_v5 }
  0x13   :  { %358 = vmatpush3.bf16.msra.mxu0 %v402_v5  ;;  %393 = vmatpush3.bf16.msra.mxu1 %v402_v5 }
  0x14   :  { %359 = vmatprep.subr.bf16.mxu0 %v403_v7  ;;  %386 = vmatprep.subr.bf16.mxu1 %v403_v7 }
  0x17   :  { %360 = vmatpush3.bf16.msra.mxu0 %v403_v7  ;;  %394 = vmatpush3.bf16.msra.mxu1 %v403_v7 }
  0x18   :  { %361 = vmatprep.subr.bf16.mxu0 %v404_v8  ;;  %387 = vmatprep.subr.bf16.mxu1 %v404_v8 }
  0x1b   :  { %362 = vmatpush3.bf16.msra.mxu0 %v404_v8  ;;  %395 = vmatpush3.bf16.msra.mxu1 %v404_v8 }
  0x1c   :  { %363 = vmatprep.subr.bf16.mxu0 %v405_v9  ;;  %388 = vmatprep.subr.bf16.mxu1 %v405_v9 }
  0x1f   :  { %364 = vmatpush3.bf16.msra.mxu0 %v405_v9  ;;  %396 = vmatpush3.bf16.msra.mxu1 %v405_v9 }
  0x22   :  { %366 = vmatmul.mubr.bf16.vlgmr.msra.gmra.mrb[0].mxu0 %v407_v10  ;;  %374 = vmatmul.mubr.bf16.vlgmr.msra.gmra.mrb[0].mxu1 %v411_v11 }
  0x23   :  { %369 = vmatprep.mubr.bf16.mxu0 %v408_v12  ;;  %377 = vmatprep.mubr.bf16.mxu1 %v412_v13 }
  0x2a   :  { %370 = vmatmul.mubr.bf16.gmra.mrb[4].mxu0 %v409_v14  ;;  %378 = vmatmul.mubr.bf16.gmra.mrb[4].mxu1 %v413_v15 }
  0xf5   :  { %v367_v17 = vpop.f32.mrb[0].mxu0  ;;  %v375_v18 = vpop.f32.mrb[0].mxu1 }
  0xf6   :  { %v182_v19 = vpop.f32.mrb[1].mxu0  ;;  %v214_v20 = vpop.f32.mrb[1].mxu1  ;;  %v272_v28 = vmul.f32 %v367_v17, %v367_v17  ;;  %v280_v60 = vmul.f32 %v375_v18, %v375_v18 }
  0xf7   :  { %v368_v21 = vpop.f32.mrb[2].mxu0  ;;  %v376_v22 = vpop.f32.mrb[2].mxu1  ;;  %v270_v25 = vmul.f32 %v182_v19, %v182_v19  ;;  %v278_v54 = vmul.f32 %v214_v20, %v214_v20 }
  0xf8   :  { %v185_v23 = vpop.f32.mrb[3].mxu0  ;;  %v217_v24 = vpop.f32.mrb[3].mxu1  ;;  %v273_v31 = vmul.f32 %v368_v21, %v368_v21  ;;  %v281_v63 = vmul.f32 %v376_v22, %v376_v22 }
  0xf9   :  { %v246_v26 = vadd.f32 %v185_v23, %v182_v19  ;;  %v271_v27 = vmul.f32 %v185_v23, %v185_v23  ;;  %v279_v59 = vmul.f32 %v217_v24, %v217_v24 }
  0xfb   :  { %v247_v29 = vadd.f32 %v367_v17, %v246_v26  ;;  %v286_v30 = vadd.f32 %v271_v27, %v270_v25  ;;  %v269_v27 = vld [vmem:[%s504_s3] sm:$0x1] }
  0xfd   :  { %v287_v32 = vadd.f32 %v286_v30, %v272_v28  ;;  %v371_v33 = vpop.f32.mrb[4].mxu0  ;;  %v248_v34 = vadd.f32 %v368_v21, %v247_v29  ;;  %v379_v35 = vpop.f32.mrb[4].mxu1 }
  0xfe   :  { %v198_v36 = vpop.f32.mrb[5].mxu0  ;;  %v230_v37 = vpop.f32.mrb[5].mxu1  ;;  %v276_v48 = vmul.f32 %v371_v33, %v371_v33  ;;  %v284_v8 = vmul.f32 %v379_v35, %v379_v35 }
  0xff   :  { %v249_v38 = vadd.f32 %v248_v34, %v198_v36  ;;  %v274_v39 = vmul.f32 %v198_v36, %v198_v36  ;;  %v288_v40 = vadd.f32 %v287_v32, %v273_v31  ;;  %v372_v41 = vpop.f32.mrb[6].mxu0  ;;  %v380_v42 = vpop.f32.mrb[6].mxu1  ;;  %v282_v2 = vmul.f32 %v230_v37, %v230_v37 }
 0x100   :  { %v201_v43 = vpop.f32.mrb[7].mxu0  ;;  %v233_v44 = vpop.f32.mrb[7].mxu1  ;;  %v277_v51 = vmul.f32 %v372_v41, %v372_v41  ;;  %v285_v11 = vmul.f32 %v380_v42, %v380_v42 }
 0x101   :  { %v289_v45 = vadd.f32 %v288_v40, %v274_v39  ;;  %v250_v46 = vadd.f32 %v249_v38, %v201_v43  ;;  %v275_v47 = vmul.f32 %v201_v43, %v201_v43  ;;  %v283_v7 = vmul.f32 %v233_v44, %v233_v44 }
 0x103   :  { %v251_v49 = vadd.f32 %v371_v33, %v250_v46  ;;  %v290_v50 = vadd.f32 %v289_v45, %v275_v47 }
 0x105   :  { %v291_v52 = vadd.f32 %v290_v50, %v276_v48  ;;  %v252_v53 = vadd.f32 %v372_v41, %v251_v49 }
 0x107   :  { %v253_v55 = vadd.f32 %v252_v53, %v214_v20  ;;  %v292_v56 = vadd.f32 %v291_v52, %v277_v51 }
 0x109   :  { %v293_v57 = vadd.f32 %v292_v56, %v278_v54  ;;  %v254_v58 = vadd.f32 %v253_v55, %v217_v24  ;;  %v245_v24 = vld [vmem:[%s503_s2] sm:$0x1] }
 0x10b   :  { %v255_v61 = vadd.f32 %v375_v18, %v254_v58  ;;  %v294_v62 = vadd.f32 %v293_v57, %v279_v59 }
 0x10d   :  { %v295_v0 = vadd.f32 %v294_v62, %v280_v60  ;;  %v256_v1 = vadd.f32 %v376_v22, %v255_v61 }
 0x10f   :  { %v257_v3 = vadd.f32 %v256_v1, %v230_v37  ;;  %v296_v4 = vadd.f32 %v295_v0, %v281_v63 }
 0x111   :  { %v297_v5 = vadd.f32 %v296_v4, %v282_v2  ;;  %v258_v6 = vadd.f32 %v257_v3, %v233_v44 }
 0x113   :  { %v259_v9 = vadd.f32 %v379_v35, %v258_v6  ;;  %v298_v10 = vadd.f32 %v297_v5, %v283_v7 }
 0x115   :  { %v260_v12 = vadd.f32 %v380_v42, %v259_v9  ;;  %v299_v13 = vadd.f32 %v298_v10, %v284_v8 }
 0x117   :  { %v261_v14 = vrot.slane %v260_v12, 4  ;;  %v300_v15 = vadd.f32 %v299_v13, %v285_v11 }
 0x119   :  { %v262_v16 = vadd.f32 %v261_v14, %v260_v12  ;;  %v301_v17 = vrot.slane %v300_v15, 4 }
 0x11b   :  { %v263_v18 = vrot.slane %v262_v16, 2  ;;  %v302_v19 = vadd.f32 %v301_v17, %v300_v15 }
 0x11d   :  { %v264_v20 = vadd.f32 %v263_v18, %v262_v16  ;;  %v303_v21 = vrot.slane %v302_v19, 2 }
 0x11f   :  { %v265_v22 = vrot.slane %v264_v20, 1  ;;  %v304_v23 = vadd.f32 %v303_v21, %v302_v19 }
 0x121   :  { %v266_v25 = vadd.f32 %v265_v22, %v264_v20  ;;  %v305_v26 = vrot.slane %v304_v23, 1 }
 0x123   :  { %v267_v28 = vadd.f32 %v266_v25, %v245_v24  ;;  %v306_v29 = vadd.f32 %v305_v26, %v304_v23 }
 0x125   :  { %268 = vst [vmem:[%s503_s2] sm:$0x1] %v267_v28  ;;  %v307_v30 = vadd.f32 %v306_v29, %v269_v27 }
 0x127   :  { %308 = vst [vmem:[%s504_s3] sm:$0x1] %v307_v30 }

// kernel: squeeze.34
= control target key start
LH: loop header
LB: loop body
LE: loop exit
PB: predicated region body
PF: predicated region fallthrough
CT: control target
= control target key end

     0   :  { %s37_s8 = smov 116   ;;  %vm7_vm0 = vcmask 31744   ;;  %s38_s9 = smov 120   ;;  %s55_s0 = inlined_call_operand.vmem [shape: f32[16], index: 0, kind: input, shape index: {}]   ;;  %s56_s1 = inlined_call_operand.vmem [shape: f32[4,4], index: 1, kind: output, shape index: {}]  }
   0x1   :  { %v4_v0 = vld [vmem:[%s55_s0] sm:$0x1]  ;;  %s36_s0 = smov 124  }
   0x2   :  { %5 = vst [vmem:[#allocation1] sm:$0x1] %v4_v0 }
   0x9   :  { %v9_v1 = vld [vmem:[#allocation1] sm:$0x1]  }
   0xa   :  { %v21_v2 = vld [vmem:[#allocation1] sm:$0x1]   ;;  %10 = vrot.lane.b32.xlu0 %v9_v1, %s36_s0 }
   0xb   :  { %22 = vrot.lane.b32.xlu1 %v21_v2, %s37_s8  ;;  %v6_v3 = vld [vmem:[#allocation1] sm:$0x1]  }
   0xc   :  { %v15_v4 = vld [vmem:[#allocation1] sm:$0x1]   ;;  %8 = vst.msk [vmem:[#allocation0] sm:$0x1] %vm7_vm0, %v6_v3  }
   0xe   :  { %16 = vrot.lane.b32.xlu0 %v15_v4, %s38_s9 }
  0x7c   :  { %v11_v5 = vpop.permute.xlu0 %10  }
  0x7d   :  { %v23_v6 = vpop.permute.xlu1 %22   ;;  %14 = vst.msk [vmem:[#allocation0 + $0x1] sm:$0x1] %vm7_vm0, %v11_v5  }
  0x7e   :  { %26 = vst.msk [vmem:[#allocation0 + $0x3] sm:$0x1] %vm7_vm0, %v23_v6  }
  0x80   :  { %v17_v7 = vpop.permute.xlu0 %16  }
  0x81   :  { %20 = vst.msk [vmem:[#allocation0 + $0x2] sm:$0x1] %vm7_vm0, %v17_v7  }
  0x88   :  { %v30_v8 = vld [vmem:[#allocation0] sm:$0xf] }
  0x89   :  { %32 = vst [vmem:[%s56_s1] sm:$0xf] %v30_v8 }

// kernel: tile.19
= control target key start
LH: loop header
LB: loop body
LE: loop exit
PB: predicated region body
PF: predicated region fallthrough
CT: control target
= control target key end

     0   :  { %vm7_vm0 = vcmask 31744   ;;  %s37_s8 = smov 4   ;;  %s38_s9 = smov 8   ;;  %vm13_vm1 = vcmask 130144   ;;  %vm19_vm2 = vcmask 97344   ;;  %vm25_vm3 = vcmask 64544   ;;  %s55_s0 = inlined_call_operand.vmem [shape: f32[4,4], index: 0, kind: input, shape index: {}]   ;;  %s56_s1 = inlined_call_operand.vmem [shape: f32[16], index: 1, kind: output, shape index: {}]  }
   0x1   :  { %v4_v0 = vld [vmem:[%s55_s0] sm:$0xf]  ;;  %s36_s0 = smov 12  }
   0x2   :  { %5 = vst [vmem:[#allocation1] sm:$0xf] %v4_v0 }
   0x9   :  { %v10_v1 = vld [vmem:[#allocation1 + $0x3] sm:$0x1]   ;;  %v22_v2 = vld [vmem:[#allocation1 + $0x1] sm:$0x1]   ;;  %v6_v3 = vld [vmem:[#allocation1] sm:$0x1]  }
   0xa   :  { %11 = vrot.lane.b32.xlu0 %v10_v1, %s36_s0  ;;  %23 = vrot.lane.b32.xlu1 %v22_v2, %s37_s8  ;;  %v16_v4 = vld [vmem:[#allocation1 + $0x2] sm:$0x1]   ;;  %8 = vst.msk [vmem:[#allocation0] sm:$0x1] %vm7_vm0, %v6_v3  }
   0xe   :  { %17 = vrot.lane.b32.xlu0 %v16_v4, %s38_s9 }
  0x7c   :  { %v12_v5 = vpop.permute.xlu0 %11   ;;  %v24_v6 = vpop.permute.xlu1 %23  }
  0x7d   :  { %14 = vst.msk [vmem:[#allocation0] sm:$0x1] %vm13_vm1, %v12_v5  }
  0x80   :  { %v18_v7 = vpop.permute.xlu0 %17  }
  0x81   :  { %20 = vst.msk [vmem:[#allocation0] sm:$0x1] %vm19_vm2, %v18_v7  }
  0x82   :  { %26 = vst.msk [vmem:[#allocation0] sm:$0x1] %vm25_vm3, %v24_v6  }
  0x89   :  { %v30_v8 = vld [vmem:[#allocation0] sm:$0x1] }
  0x8a   :  { %32 = vst [vmem:[%s56_s1] sm:$0x1] %v30_v8 }

// kernel: tile.18
= control target key start
LH: loop header
LB: loop body
LE: loop exit
PB: predicated region body
PF: predicated region fallthrough
CT: control target
= control target key end

     0   :  { %s22_s0 = inlined_call_operand.vmem [shape: f32[4], index: 0, kind: input, shape index: {}]   ;;  %s23_s1 = inlined_call_operand.vmem [shape: f32[4,4], index: 1, kind: output, shape index: {}]  }
   0x1   :  { %v4_v0 = vld [vmem:[%s22_s0] ss:$0 sm:$0xff] }
   0x2   :  { %5 = vst [vmem:[%s23_s1] sm:$0xf] %v4_v0 }

// kernel: unet_block_forward.7
= control target key start
LH: loop header
LB: loop body
LE: loop exit
PB: predicated region body
PF: predicated region fallthrough
CT: control target
= control target key end

     0   :  { %s568_s1 = inlined_call_operand.vmem [shape: bf16[128,128], index: 1, kind: input, shape index: {}]   ;;  %s569_s0 = inlined_call_operand.vmem [shape: bf16[128,128], index: 0, kind: input, shape index: {}]   ;;  %s570_s2 = inlined_call_operand.vmem [shape: f32[1,128], index: 2, kind: input, shape index: {}]   ;;  %s571_s3 = inlined_call_operand.vmem [shape: f32[1,128], index: 3, kind: input, shape index: {}]   ;;  %s572_s4 = inlined_call_operand.vmem [shape: f32[128,128], index: 4, kind: output, shape index: {}]  }
   0x1   :  { %v407_v0 = vld [vmem:[%s568_s1] sm:$0xff]   ;;  %v408_v1 = vld [vmem:[%s568_s1 + $0x8] sm:$0xff]   ;;  %v409_v2 = vld [vmem:[%s568_s1 + $0x10] sm:$0xff]  }
   0x2   :  { %359 = vmatprep.subr.bf16.mxu0 %v407_v0  ;;  %391 = vmatprep.subr.bf16.mxu1 %v407_v0  ;;  %v410_v3 = vld [vmem:[%s568_s1 + $0x18] sm:$0xff]   ;;  %v415_v4 = vld [vmem:[%s569_s0] sm:$0xff]   ;;  %v412_v7 = vld [vmem:[%s568_s1 + $0x28] sm:$0xff]  }
   0x3   :  { %360 = vmatpush3.bf16.msra.mxu0 %v407_v0  ;;  %399 = vmatpush3.bf16.msra.mxu1 %v407_v0  ;;  %v416_v5 = vld [vmem:[%s569_s0 + $0x20] sm:$0xff]   ;;  %v413_v8 = vld [vmem:[%s568_s1 + $0x30] sm:$0xff]   ;;  %v414_v9 = vld [vmem:[%s568_s1 + $0x38] sm:$0xff]  }
   0x4   :  { %361 = vmatprep.subr.bf16.mxu0 %v408_v1  ;;  %392 = vmatprep.subr.bf16.mxu1 %v408_v1  ;;  %v411_v6 = vld [vmem:[%s568_s1 + $0x20] sm:$0xff]   ;;  %v417_v10 = vld [vmem:[%s569_s0 + $0x8] sm:$0xff]   ;;  %v419_v12 = vld [vmem:[%s569_s0 + $0x10] sm:$0xff]  }
   0x5   :  { %375 = vmatprep.mubr.bf16.mxu0 %v415_v4  ;;  %383 = vmatprep.mubr.bf16.mxu1 %v416_v5  ;;  %v418_v11 = vld [vmem:[%s569_s0 + $0x28] sm:$0xff]   ;;  %v420_v13 = vld [vmem:[%s569_s0 + $0x30] sm:$0xff]   ;;  %v421_v14 = vld [vmem:[%s569_s0 + $0x18] sm:$0xff]  }
   0x6   :  { %v422_v15 = vld [vmem:[%s569_s0 + $0x38] sm:$0xff]   ;;  %v341_v16 = vld [vmem:[%s570_s2] ss:$0 sm:$0xff] }
   0x7   :  { %362 = vmatpush3.bf16.msra.mxu0 %v408_v1  ;;  %400 = vmatpush3.bf16.msra.mxu1 %v408_v1  ;;  %v502_v18 = vld [vmem:[%s571_s3] ss:$0 sm:$0xff] }
   0x8   :  { %363 = vmatprep.subr.bf16.mxu0 %v409_v2  ;;  %393 = vmatprep.subr.bf16.mxu1 %v409_v2 }
   0xb   :  { %364 = vmatpush3.bf16.msra.mxu0 %v409_v2  ;;  %401 = vmatpush3.bf16.msra.mxu1 %v409_v2 }
   0xc   :  { %365 = vmatprep.subr.bf16.mxu0 %v410_v3  ;;  %394 = vmatprep.subr.bf16.mxu1 %v410_v3 }
   0xf   :  { %366 = vmatpush3.bf16.msra.mxu0 %v410_v3  ;;  %402 = vmatpush3.bf16.msra.mxu1 %v410_v3 }
  0x10   :  { %367 = vmatprep.subr.bf16.mxu0 %v411_v6  ;;  %395 = vmatprep.subr.bf16.mxu1 %v411_v6 }
  0x13   :  { %368 = vmatpush3.bf16.msra.mxu0 %v411_v6  ;;  %403 = vmatpush3.bf16.msra.mxu1 %v411_v6 }
  0x14   :  { %369 = vmatprep.subr.bf16.mxu0 %v412_v7  ;;  %396 = vmatprep.subr.bf16.mxu1 %v412_v7 }
  0x17   :  { %370 = vmatpush3.bf16.msra.mxu0 %v412_v7  ;;  %404 = vmatpush3.bf16.msra.mxu1 %v412_v7 }
  0x18   :  { %371 = vmatprep.subr.bf16.mxu0 %v413_v8  ;;  %397 = vmatprep.subr.bf16.mxu1 %v413_v8 }
  0x1b   :  { %372 = vmatpush3.bf16.msra.mxu0 %v413_v8  ;;  %405 = vmatpush3.bf16.msra.mxu1 %v413_v8 }
  0x1c   :  { %373 = vmatprep.subr.bf16.mxu0 %v414_v9  ;;  %398 = vmatprep.subr.bf16.mxu1 %v414_v9 }
  0x1f   :  { %374 = vmatpush3.bf16.msra.mxu0 %v414_v9  ;;  %406 = vmatpush3.bf16.msra.mxu1 %v414_v9 }
  0x22   :  { %376 = vmatmul.mubr.bf16.vlgmr.msra.gmra.mrb[0].mxu0 %v417_v10  ;;  %384 = vmatmul.mubr.bf16.vlgmr.msra.gmra.mrb[0].mxu1 %v418_v11 }
  0x23   :  { %379 = vmatprep.mubr.bf16.mxu0 %v419_v12  ;;  %387 = vmatprep.mubr.bf16.mxu1 %v420_v13 }
  0x2a   :  { %380 = vmatmul.mubr.bf16.gmra.mrb[4].mxu0 %v421_v14  ;;  %388 = vmatmul.mubr.bf16.gmra.mrb[4].mxu1 %v422_v15 }
  0xf5   :  { %v377_v17 = vpop.f32.mrb[0].mxu0  ;;  %v385_v19 = vpop.f32.mrb[0].mxu1 }
  0xf6   :  { %v252_v20 = vmul.f32 %v377_v17, %v341_v16  ;;  %v260_v21 = vmul.f32 %v385_v19, %v341_v16  ;;  %v180_v22 = vpop.f32.mrb[1].mxu0  ;;  %v212_v23 = vpop.f32.mrb[1].mxu1 }
  0xf7   :  { %v250_v24 = vmul.f32 %v341_v16, %v180_v22  ;;  %v258_v25 = vmul.f32 %v341_v16, %v212_v23  ;;  %v378_v26 = vpop.f32.mrb[2].mxu0  ;;  %v386_v27 = vpop.f32.mrb[2].mxu1 }
  0xf8   :  { %v275_v28 = vadd.f32 %v502_v18, %v252_v20  ;;  %v283_v29 = vadd.f32 %v502_v18, %v260_v21  ;;  %v253_v30 = vmul.f32 %v378_v26, %v341_v16  ;;  %v261_v31 = vmul.f32 %v386_v27, %v341_v16  ;;  %v183_v32 = vpop.f32.mrb[3].mxu0  ;;  %v215_v33 = vpop.f32.mrb[3].mxu1 }
  0xf9   :  { %v273_v34 = vadd.f32 %v502_v18, %v250_v24  ;;  %v281_v35 = vadd.f32 %v502_v18, %v258_v25  ;;  %v251_v36 = vmul.f32 %v341_v16, %v183_v32  ;;  %v259_v37 = vmul.f32 %v341_v16, %v215_v33 }
  0xfa   :  { %v291_v38 = vmax.f32 %v275_v28, 0.0  ;;  %v299_v39 = vmax.f32 %v283_v29, 0.0  ;;  %v276_v40 = vadd.f32 %v502_v18, %v253_v30  ;;  %v284_v41 = vadd.f32 %v502_v18, %v261_v31 }
  0xfb   :  { %v289_v42 = vmax.f32 %v273_v34, 0.0  ;;  %v297_v43 = vmax.f32 %v281_v35, 0.0  ;;  %v274_v44 = vadd.f32 %v502_v18, %v251_v36  ;;  %v282_v45 = vadd.f32 %v502_v18, %v259_v37 }
  0xfc   :  { %307 = vst [vmem:[%s572_s4 + $0x10] sm:$0xff] %v291_v38  ;;  %315 = vst [vmem:[%s572_s4 + $0x50] sm:$0xff] %v299_v39  ;;  %v292_v46 = vmax.f32 %v276_v40, 0.0  ;;  %v300_v47 = vmax.f32 %v284_v41, 0.0 }
  0xfd   :  { %305 = vst [vmem:[%s572_s4] sm:$0xff] %v289_v42  ;;  %313 = vst [vmem:[%s572_s4 + $0x40] sm:$0xff] %v297_v43  ;;  %v290_v48 = vmax.f32 %v274_v44, 0.0  ;;  %v298_v49 = vmax.f32 %v282_v45, 0.0  ;;  %v381_v50 = vpop.f32.mrb[4].mxu0  ;;  %v389_v51 = vpop.f32.mrb[4].mxu1 }
  0xfe   :  { %308 = vst [vmem:[%s572_s4 + $0x18] sm:$0xff] %v292_v46  ;;  %316 = vst [vmem:[%s572_s4 + $0x58] sm:$0xff] %v300_v47  ;;  %v256_v52 = vmul.f32 %v381_v50, %v341_v16  ;;  %v264_v53 = vmul.f32 %v389_v51, %v341_v16  ;;  %v196_v54 = vpop.f32.mrb[5].mxu0  ;;  %v228_v55 = vpop.f32.mrb[5].mxu1 }
  0xff   :  { %306 = vst [vmem:[%s572_s4 + $0x8] sm:$0xff] %v290_v48  ;;  %314 = vst [vmem:[%s572_s4 + $0x48] sm:$0xff] %v298_v49  ;;  %v254_v56 = vmul.f32 %v341_v16, %v196_v54  ;;  %v262_v57 = vmul.f32 %v341_v16, %v228_v55  ;;  %v382_v58 = vpop.f32.mrb[6].mxu0  ;;  %v390_v59 = vpop.f32.mrb[6].mxu1 }
 0x100   :  { %v279_v60 = vadd.f32 %v502_v18, %v256_v52  ;;  %v287_v61 = vadd.f32 %v502_v18, %v264_v53  ;;  %v257_v62 = vmul.f32 %v382_v58, %v341_v16  ;;  %v265_v63 = vmul.f32 %v390_v59, %v341_v16  ;;  %v199_v0 = vpop.f32.mrb[7].mxu0  ;;  %v231_v1 = vpop.f32.mrb[7].mxu1 }
 0x101   :  { %v277_v2 = vadd.f32 %v502_v18, %v254_v56  ;;  %v285_v3 = vadd.f32 %v502_v18, %v262_v57  ;;  %v255_v4 = vmul.f32 %v341_v16, %v199_v0  ;;  %v263_v5 = vmul.f32 %v341_v16, %v231_v1 }
 0x102   :  { %v295_v6 = vmax.f32 %v279_v60, 0.0  ;;  %v303_v7 = vmax.f32 %v287_v61, 0.0  ;;  %v280_v8 = vadd.f32 %v502_v18, %v257_v62  ;;  %v288_v9 = vadd.f32 %v502_v18, %v265_v63 }
 0x103   :  { %v293_v10 = vmax.f32 %v277_v2, 0.0  ;;  %v301_v11 = vmax.f32 %v285_v3, 0.0  ;;  %v278_v12 = vadd.f32 %v502_v18, %v255_v4  ;;  %v286_v13 = vadd.f32 %v502_v18, %v263_v5 }
 0x104   :  { %311 = vst [vmem:[%s572_s4 + $0x30] sm:$0xff] %v295_v6  ;;  %319 = vst [vmem:[%s572_s4 + $0x70] sm:$0xff] %v303_v7  ;;  %v296_v14 = vmax.f32 %v280_v8, 0.0  ;;  %v304_v15 = vmax.f32 %v288_v9, 0.0 }
 0x105   :  { %309 = vst [vmem:[%s572_s4 + $0x20] sm:$0xff] %v293_v10  ;;  %317 = vst [vmem:[%s572_s4 + $0x60] sm:$0xff] %v301_v11  ;;  %v294_v16 = vmax.f32 %v278_v12, 0.0  ;;  %v302_v17 = vmax.f32 %v286_v13, 0.0 }
 0x106   :  { %312 = vst [vmem:[%s572_s4 + $0x38] sm:$0xff] %v296_v14  ;;  %320 = vst [vmem:[%s572_s4 + $0x78] sm:$0xff] %v304_v15 }
 0x107   :  { %310 = vst [vmem:[%s572_s4 + $0x28] sm:$0xff] %v294_v16  ;;  %318 = vst [vmem:[%s572_s4 + $0x68] sm:$0xff] %v302_v17 }

</bundles_post_ra>
